<compile_context>
chip_gen: v7x
topology: tpu7x:2x2x1
jax: 0.10.0
libtpu: 0.0.40
codegen_flags: <defaults>
</compile_context>

<pallas_src>
import functools

import jax
import jax.numpy as jnp
import numpy as np
from jax.experimental import pallas as pl
from jax.experimental.pallas import tpu as pltpu

_VMEM = pl.BlockSpec(memory_space=pltpu.MemorySpace.VMEM)
_SMEM = pl.BlockSpec(memory_space=pltpu.MemorySpace.SMEM)


# ---------------------------------------------------------------------------
# In-kernel helpers (pure functions on loaded values)
# ---------------------------------------------------------------------------
def _extract(x, w1, b1, wf1, bf1, wf2, bf2):
    """layer1 + feature[0]: (Linear->ReLU->Dropout[id]) dense stages."""
    h = jnp.maximum(jnp.dot(x, w1, preferred_element_type=jnp.float32) + b1, 0.0)
    z = jnp.maximum(jnp.dot(h, wf1, preferred_element_type=jnp.float32) + bf1, 0.0)
    return jnp.maximum(jnp.dot(z, wf2, preferred_element_type=jnp.float32) + bf2, 0.0)


def _log_softmax(h, wc, bc):
    logits = jnp.dot(h, wc, preferred_element_type=jnp.float32) + bc
    m = jnp.max(logits, axis=-1, keepdims=True)
    lse = m + jnp.log(jnp.sum(jnp.exp(logits - m), axis=-1, keepdims=True))
    return logits - lse                               # LogSoftmax(dim=-1)


def _nll_rows(y_a, tgt):
    """NLLLoss(reduction='none') per row; tgt is (B,1) int32."""
    B, C = y_a.shape
    onehot = (jax.lax.broadcasted_iota(jnp.int32, (B, C), 1)
              == tgt).astype(jnp.float32)
    return -jnp.sum(onehot * y_a, axis=-1, keepdims=True)     # (B, 1)


# ---------------------------------------------------------------------------
# Fused kernels (one pallas_call per forward mode)
# ---------------------------------------------------------------------------
def _fused_train_kernel(xa_ref, xp_ref, xn_ref, tgt_ref,
                        w1_ref, b1_ref, wf1_ref, bf1_ref,
                        wf2_ref, bf2_ref, wc_ref, bc_ref,
                        probs_ref, ha_ref, loss_ref,
                        xstack_ref,
                        *, B, alpha, lambda1, lambda2):
    # Stack anchor|positive|negative into one (3B, D) VMEM scratch so the
    # feature-MLP weights are loaded once and each MXU matmul works on 3x rows.
    xstack_ref[0:B, :] = xa_ref[...]
    xstack_ref[B:2 * B, :] = xp_ref[...]
    xstack_ref[2 * B:3 * B, :] = xn_ref[...]

    hh = _extract(xstack_ref[...], w1_ref[...], b1_ref[...], wf1_ref[...],
                  bf1_ref[...], wf2_ref[...], bf2_ref[...])        # (3B, H)
    h_a = hh[:B]
    h_p = hh[B:2 * B]
    h_n = hh[2 * B:3 * B]
    ha_ref[...] = h_a

    # Classifier + LogSoftmax on the anchor batch only.
    y_a = _log_softmax(h_a, wc_ref[...], bc_ref[...])
    probs_ref[...] = jnp.exp(y_a)

    ce = _nll_rows(y_a, tgt_ref[...])                              # (B, 1)

    # Triplet + L2 terms. rsqrt on squared norms replaces sqrt+divide (EUP).
    dot_p = jnp.sum(h_a * h_p, axis=-1, keepdims=True)
    dot_n = jnp.sum(h_a * h_n, axis=-1, keepdims=True)
    ss_a = jnp.sum(h_a * h_a, axis=-1, keepdims=True)
    ss_p = jnp.sum(h_p * h_p, axis=-1, keepdims=True)
    ss_n = jnp.sum(h_n * h_n, axis=-1, keepdims=True)
    d_plus = 1.0 - dot_p * jax.lax.rsqrt(ss_a * ss_p)
    d_minus = 1.0 - dot_n * jax.lax.rsqrt(ss_a * ss_n)
    trip = lambda1 * jnp.abs(d_plus - d_minus + alpha)
    l2 = lambda2 * (jnp.sqrt(ss_a) + jnp.sqrt(ss_p) + jnp.sqrt(ss_n))

    total = ce + trip + l2                                         # (B, 1)
    loss_ref[0, 0] = jnp.sum(total)                 # total_loss.sum(dim=-1)


def _fused_eval_kernel(x_ref, tgt_ref, w1_ref, b1_ref, wf1_ref, bf1_ref,
                       wf2_ref, bf2_ref, wc_ref, bc_ref,
                       probs_ref, ha_ref, loss_ref):
    h_a = _extract(x_ref[...], w1_ref[...], b1_ref[...], wf1_ref[...],
                   bf1_ref[...], wf2_ref[...], bf2_ref[...])
    ha_ref[...] = h_a
    y_a = _log_softmax(h_a, wc_ref[...], bc_ref[...])
    probs_ref[...] = jnp.exp(y_a)
    loss_ref[0, 0] = jnp.sum(_nll_rows(y_a, tgt_ref[...]))   # ce_loss.sum(dim=-1)


def _fused_predict_kernel(x_ref, w1_ref, b1_ref, wf1_ref, bf1_ref,
                          wf2_ref, bf2_ref, wc_ref, bc_ref,
                          probs_ref, ha_ref):
    h_a = _extract(x_ref[...], w1_ref[...], b1_ref[...], wf1_ref[...],
                   bf1_ref[...], wf2_ref[...], bf2_ref[...])
    ha_ref[...] = h_a
    probs_ref[...] = jnp.exp(_log_softmax(h_a, wc_ref[...], bc_ref[...]))


# ---------------------------------------------------------------------------
# Wrapper (mirrors MetricLearningModel.forward)
# ---------------------------------------------------------------------------
def metric_learning_forward(params, example_batch, targets=None,
                            positive_batch=None, negative_batch=None,
                            *, alpha=0.5, lambda1=0.5, lambda2=0.001):
    """Returns (probs, h_a, batch_loss) like MetricLearningModel.forward."""
    B, D = example_batch.shape
    H = params["w1"].shape[1]
    C = params["wc"].shape[1]
    weights = (params["w1"], params["b1"], params["wf1"], params["bf1"],
               params["wf2"], params["bf2"], params["wc"], params["bc"])
    train_mode = (positive_batch is not None and negative_batch is not None
                  and targets is not None)

    # TODO(synk): add a batch grid (dimension_semantics=("parallel",)) + bf16
    # matmuls once B / feature dims are large enough to matter (v7x 2-TC).
    if train_mode:
        tgt = targets.astype(jnp.int32).reshape(-1, 1)
        kernel = functools.partial(_fused_train_kernel, B=B, alpha=alpha,
                                   lambda1=lambda1, lambda2=lambda2)
        probs, h_a, loss = pl.pallas_call(
            kernel,
            out_shape=(jax.ShapeDtypeStruct((B, C), jnp.float32),
                       jax.ShapeDtypeStruct((B, H), jnp.float32),
                       jax.ShapeDtypeStruct((1, 1), jnp.float32)),
            in_specs=[_VMEM] * 12,
            out_specs=(_VMEM, _VMEM, _SMEM),
            scratch_shapes=[pltpu.VMEM((3 * B, D), jnp.float32)],
        )(example_batch, positive_batch, negative_batch, tgt, *weights)
        return probs, h_a, loss[0, 0]

    if targets is not None:
        tgt = targets.astype(jnp.int32).reshape(-1, 1)
        probs, h_a, loss = pl.pallas_call(
            _fused_eval_kernel,
            out_shape=(jax.ShapeDtypeStruct((B, C), jnp.float32),
                       jax.ShapeDtypeStruct((B, H), jnp.float32),
                       jax.ShapeDtypeStruct((1, 1), jnp.float32)),
            in_specs=[_VMEM] * 10,
            out_specs=(_VMEM, _VMEM, _SMEM),
        )(example_batch, tgt, *weights)
        return probs, h_a, loss[0, 0]

    probs, h_a = pl.pallas_call(
        _fused_predict_kernel,
        out_shape=(jax.ShapeDtypeStruct((B, C), jnp.float32),
                   jax.ShapeDtypeStruct((B, H), jnp.float32)),
        in_specs=[_VMEM] * 9,
        out_specs=(_VMEM, _VMEM),
    )(example_batch, *weights)
    return probs, h_a, None


# ---------------------------------------------------------------------------
# Pure-JAX reference (PyTorch-faithful, for correctness checks)
# ---------------------------------------------------------------------------
def _ref_extract(params, x):
    h = jnp.maximum(x @ params["w1"] + params["b1"], 0.0)
    z = jnp.maximum(h @ params["wf1"] + params["bf1"], 0.0)
    return jnp.maximum(z @ params["wf2"] + params["bf2"], 0.0)


def _ref_classify(params, h_a):
    logits = h_a @ params["wc"] + params["bc"]
    y_a = jax.nn.log_softmax(logits, axis=-1)
    return jnp.exp(y_a), y_a


def _ref_forward_train(params, x, tgt, xp, xn,
                       alpha=0.5, lambda1=0.5, lambda2=0.001):
    h_a = _ref_extract(params, x)
    probs, y_a = _ref_classify(params, h_a)
    ce = -jnp.take_along_axis(y_a, tgt[:, None], axis=-1)[:, 0]
    h_p = _ref_extract(params, xp)
    h_n = _ref_extract(params, xn)
    dot_p = jnp.sum(h_a * h_p, -1)
    dot_n = jnp.sum(h_a * h_n, -1)
    mag_a = jnp.linalg.norm(h_a, axis=-1)
    mag_p = jnp.linalg.norm(h_p, axis=-1)
    mag_n = jnp.linalg.norm(h_n, axis=-1)
    d_plus = 1 - dot_p / (mag_a * mag_p)
    d_minus = 1 - dot_n / (mag_a * mag_n)
    total = (ce + lambda1 * jnp.abs(d_plus - d_minus + alpha)
             + lambda2 * (mag_a + mag_p + mag_n))
    return probs, h_a, jnp.sum(total)


def _ref_forward_eval(params, x, tgt):
    h_a = _ref_extract(params, x)
    probs, y_a = _ref_classify(params, h_a)
    ce = -jnp.take_along_axis(y_a, tgt[:, None], axis=-1)[:, 0]
    return probs, h_a, jnp.sum(ce)


# ---------------------------------------------------------------------------
def init_params(key, input_dim, hidden_dim):
    internal_dim = hidden_dim // 2
    ks = jax.random.split(key, 8)

    def lin(kw, kb, fan_in, fan_out):
        lim = 1.0 / np.sqrt(fan_in)
        w = jax.random.uniform(kw, (fan_in, fan_out), jnp.float32, -lim, lim)
        b = jax.random.uniform(kb, (1, fan_out), jnp.float32, -lim, lim)
        return w, b

    w1, b1 = lin(ks[0], ks[1], input_dim, hidden_dim)
    wf1, bf1 = lin(ks[2], ks[3], hidden_dim, internal_dim)
    wf2, bf2 = lin(ks[4], ks[5], internal_dim, hidden_dim)
    wc, bc = lin(ks[6], ks[7], hidden_dim, 2)
    return dict(w1=w1, b1=b1, wf1=wf1, bf1=bf1, wf2=wf2, bf2=bf2, wc=wc, bc=bc)


if __name__ == "__main__":
    B, INPUT_DIM, HIDDEN_DIM = 8, 32, 64
    key = jax.random.PRNGKey(0)
    kp, kx, kpp, kn, kt = jax.random.split(key, 5)

    params = init_params(kp, INPUT_DIM, HIDDEN_DIM)
    example_batch = jax.random.normal(kx, (B, INPUT_DIM), jnp.float32)
    positive_batch = jax.random.normal(kpp, (B, INPUT_DIM), jnp.float32)
    negative_batch = jax.random.normal(kn, (B, INPUT_DIM), jnp.float32)
    targets = jax.random.randint(kt, (B,), 0, 2, jnp.int32)

    # --- train mode (anchor + positive + negative + targets) ---------------
    probs, h_a, batch_loss = metric_learning_forward(
        params, example_batch, targets, positive_batch, negative_batch)
    jax.block_until_ready((probs, h_a, batch_loss))

    r_probs, r_h_a, r_loss = _ref_forward_train(
        params, example_batch, targets, positive_batch, negative_batch)
    np.testing.assert_allclose(np.asarray(probs), np.asarray(r_probs),
                               rtol=1e-5, atol=1e-5)
    np.testing.assert_allclose(np.asarray(h_a), np.asarray(r_h_a),
                               rtol=1e-5, atol=1e-5)
    # loss uses EUP rsqrt for the cosine-distance divides -> slightly looser.
    np.testing.assert_allclose(float(batch_loss), float(r_loss),
                               rtol=1e-4, atol=1e-3)

    # --- eval mode (targets only -> summed NLL) -----------------------------
    probs2, h_a2, ce_loss = metric_learning_forward(params, example_batch, targets)
    jax.block_until_ready((probs2, h_a2, ce_loss))
    r_probs2, r_h_a2, r_ce = _ref_forward_eval(params, example_batch, targets)
    np.testing.assert_allclose(np.asarray(probs2), np.asarray(r_probs2),
                               rtol=1e-5, atol=1e-5)
    np.testing.assert_allclose(np.asarray(h_a2), np.asarray(r_h_a2),
                               rtol=1e-5, atol=1e-5)
    np.testing.assert_allclose(float(ce_loss), float(r_ce),
                               rtol=1e-5, atol=1e-4)

    # --- predict mode (no targets -> loss is None) ---------------------------
    probs3, h_a3, no_loss = metric_learning_forward(params, example_batch)
    jax.block_until_ready((probs3, h_a3))
    assert no_loss is None
    np.testing.assert_allclose(np.asarray(probs3), np.asarray(r_probs2),
                               rtol=1e-5, atol=1e-5)

    print("KERNEL_OK")
</pallas_src>

<mosaic_0001>
module attributes {stable_mosaic.version = 11 : i64} {
  func.func @_fused_train_kernel(%arg0: memref<8x32xf32, #tpu.memory_space<vmem>>, %arg1: memref<8x32xf32, #tpu.memory_space<vmem>>, %arg2: memref<8x32xf32, #tpu.memory_space<vmem>>, %arg3: memref<8x1xi32, #tpu.memory_space<vmem>>, %arg4: memref<32x64xf32, #tpu.memory_space<vmem>>, %arg5: memref<1x64xf32, #tpu.memory_space<vmem>>, %arg6: memref<64x32xf32, #tpu.memory_space<vmem>>, %arg7: memref<1x32xf32, #tpu.memory_space<vmem>>, %arg8: memref<32x64xf32, #tpu.memory_space<vmem>>, %arg9: memref<1x64xf32, #tpu.memory_space<vmem>>, %arg10: memref<64x2xf32, #tpu.memory_space<vmem>>, %arg11: memref<1x2xf32, #tpu.memory_space<vmem>>, %arg12: memref<8x2xf32, #tpu.memory_space<vmem>>, %arg13: memref<8x64xf32, #tpu.memory_space<vmem>>, %arg14: memref<1x1xf32, #tpu.memory_space<smem>>, %arg15: memref<24x32xf32, #tpu.memory_space<vmem>>) attributes {dimension_semantics = [], scalar_prefetch = 0 : i64, scratch_operands = 1 : i64, tpu.core_type = #tpu.core_type<tc>} {
    %c0 = arith.constant 0 : index
    %c0_0 = arith.constant 0 : index
    %0 = vector.load %arg0[%c0, %c0_0] : memref<8x32xf32, #tpu.memory_space<vmem>>, vector<8x32xf32>
    %c0_1 = arith.constant 0 : index
    %c0_2 = arith.constant 0 : index
    %1 = vector.load %arg15[%c0_1, %c0_2] : memref<24x32xf32, #tpu.memory_space<vmem>>, vector<8x32xf32>
    tpu.vector_store %arg15[%c0_1, %c0_2], %0 {strides = array<i32>} : memref<24x32xf32, #tpu.memory_space<vmem>>, vector<8x32xf32>,
    %c0_3 = arith.constant 0 : index
    %c0_4 = arith.constant 0 : index
    %2 = vector.load %arg1[%c0_3, %c0_4] : memref<8x32xf32, #tpu.memory_space<vmem>>, vector<8x32xf32>
    %c8 = arith.constant 8 : index
    %c0_5 = arith.constant 0 : index
    %3 = vector.load %arg15[%c8, %c0_5] : memref<24x32xf32, #tpu.memory_space<vmem>>, vector<8x32xf32>
    tpu.vector_store %arg15[%c8, %c0_5], %2 {strides = array<i32>} : memref<24x32xf32, #tpu.memory_space<vmem>>, vector<8x32xf32>,
    %c0_6 = arith.constant 0 : index
    %c0_7 = arith.constant 0 : index
    %4 = vector.load %arg2[%c0_6, %c0_7] : memref<8x32xf32, #tpu.memory_space<vmem>>, vector<8x32xf32>
    %c16 = arith.constant 16 : index
    %c0_8 = arith.constant 0 : index
    %5 = vector.load %arg15[%c16, %c0_8] : memref<24x32xf32, #tpu.memory_space<vmem>>, vector<8x32xf32>
    tpu.vector_store %arg15[%c16, %c0_8], %4 {strides = array<i32>} : memref<24x32xf32, #tpu.memory_space<vmem>>, vector<8x32xf32>,
    %c0_9 = arith.constant 0 : index
    %c0_10 = arith.constant 0 : index
    %6 = vector.load %arg15[%c0_9, %c0_10] : memref<24x32xf32, #tpu.memory_space<vmem>>, vector<24x32xf32>
    %c0_11 = arith.constant 0 : index
    %c0_12 = arith.constant 0 : index
    %7 = vector.load %arg4[%c0_11, %c0_12] : memref<32x64xf32, #tpu.memory_space<vmem>>, vector<32x64xf32>
    %c0_13 = arith.constant 0 : index
    %c0_14 = arith.constant 0 : index
    %8 = vector.load %arg5[%c0_13, %c0_14] : memref<1x64xf32, #tpu.memory_space<vmem>>, vector<1x64xf32>
    %c0_15 = arith.constant 0 : index
    %c0_16 = arith.constant 0 : index
    %9 = vector.load %arg6[%c0_15, %c0_16] : memref<64x32xf32, #tpu.memory_space<vmem>>, vector<64x32xf32>
    %c0_17 = arith.constant 0 : index
    %c0_18 = arith.constant 0 : index
    %10 = vector.load %arg7[%c0_17, %c0_18] : memref<1x32xf32, #tpu.memory_space<vmem>>, vector<1x32xf32>
    %c0_19 = arith.constant 0 : index
    %c0_20 = arith.constant 0 : index
    %11 = vector.load %arg8[%c0_19, %c0_20] : memref<32x64xf32, #tpu.memory_space<vmem>>, vector<32x64xf32>
    %c0_21 = arith.constant 0 : index
    %c0_22 = arith.constant 0 : index
    %12 = vector.load %arg9[%c0_21, %c0_22] : memref<1x64xf32, #tpu.memory_space<vmem>>, vector<1x64xf32>
    %cst = arith.constant dense<0.000000e+00> : vector<24x64xf32>
    %13 = tpu.matmul %6, %7, %cst {dimension_numbers = #tpu.dot_dimension_numbers<[1], [0], [0], [1], [0, 0, 1, 1], [], []>} : vector<24x32xf32>, vector<32x64xf32>, vector<24x64xf32> -> vector<24x64xf32>
    %14 = vector.broadcast %8 : vector<1x64xf32> to vector<24x64xf32>
    %15 = arith.addf %13, %14 : vector<24x64xf32>
    %cst_23 = arith.constant 0.000000e+00 : f32
    %16 = vector.broadcast %cst_23 : f32 to vector<24x64xf32>
    %17 = arith.maximumf %15, %16 : vector<24x64xf32>
    %cst_24 = arith.constant dense<0.000000e+00> : vector<24x32xf32>
    %18 = tpu.matmul %17, %9, %cst_24 {dimension_numbers = #tpu.dot_dimension_numbers<[1], [0], [0], [1], [0, 0, 1, 1], [], []>} : vector<24x64xf32>, vector<64x32xf32>, vector<24x32xf32> -> vector<24x32xf32>
    %19 = vector.broadcast %10 : vector<1x32xf32> to vector<24x32xf32>
    %20 = arith.addf %18, %19 : vector<24x32xf32>
    %cst_25 = arith.constant 0.000000e+00 : f32
    %21 = vector.broadcast %cst_25 : f32 to vector<24x32xf32>
    %22 = arith.maximumf %20, %21 : vector<24x32xf32>
    %cst_26 = arith.constant dense<0.000000e+00> : vector<24x64xf32>
    %23 = tpu.matmul %22, %11, %cst_26 {dimension_numbers = #tpu.dot_dimension_numbers<[1], [0], [0], [1], [0, 0, 1, 1], [], []>} : vector<24x32xf32>, vector<32x64xf32>, vector<24x64xf32> -> vector<24x64xf32>
    %24 = vector.broadcast %12 : vector<1x64xf32> to vector<24x64xf32>
    %25 = arith.addf %23, %24 : vector<24x64xf32>
    %cst_27 = arith.constant 0.000000e+00 : f32
    %26 = vector.broadcast %cst_27 : f32 to vector<24x64xf32>
    %27 = arith.maximumf %25, %26 : vector<24x64xf32>
    %28 = vector.extract_strided_slice %27 {offsets = [0, 0], sizes = [8, 64], strides = [1, 1]} : vector<24x64xf32> to vector<8x64xf32>
    %29 = vector.extract_strided_slice %27 {offsets = [8, 0], sizes = [8, 64], strides = [1, 1]} : vector<24x64xf32> to vector<8x64xf32>
    %30 = vector.extract_strided_slice %27 {offsets = [16, 0], sizes = [8, 64], strides = [1, 1]} : vector<24x64xf32> to vector<8x64xf32>
    %c0_28 = arith.constant 0 : index
    %c0_29 = arith.constant 0 : index
    %31 = vector.load %arg13[%c0_28, %c0_29] : memref<8x64xf32, #tpu.memory_space<vmem>>, vector<8x64xf32>
    tpu.vector_store %arg13[%c0_28, %c0_29], %28 {strides = array<i32>} : memref<8x64xf32, #tpu.memory_space<vmem>>, vector<8x64xf32>,
    %c0_30 = arith.constant 0 : index
    %c0_31 = arith.constant 0 : index
    %32 = vector.load %arg10[%c0_30, %c0_31] : memref<64x2xf32, #tpu.memory_space<vmem>>, vector<64x2xf32>
    %c0_32 = arith.constant 0 : index
    %c0_33 = arith.constant 0 : index
    %33 = vector.load %arg11[%c0_32, %c0_33] : memref<1x2xf32, #tpu.memory_space<vmem>>, vector<1x2xf32>
    %cst_34 = arith.constant dense<0.000000e+00> : vector<8x2xf32>
    %34 = tpu.matmul %28, %32, %cst_34 {dimension_numbers = #tpu.dot_dimension_numbers<[1], [0], [0], [1], [0, 0, 1, 1], [], []>} : vector<8x64xf32>, vector<64x2xf32>, vector<8x2xf32> -> vector<8x2xf32>
    %35 = vector.broadcast %33 : vector<1x2xf32> to vector<8x2xf32>
    %36 = arith.addf %34, %35 : vector<8x2xf32>
    %cst_35 = arith.constant dense<0xFF800000> : vector<8xf32>
    %37 = vector.multi_reduction <maximumf>, %36, %cst_35 [1] : vector<8x2xf32> to vector<8xf32>
    %38 = vector.shape_cast %37 : vector<8xf32> to vector<8x1xf32>
    %39 = vector.broadcast %38 : vector<8x1xf32> to vector<8x2xf32>
    %40 = arith.subf %36, %39 : vector<8x2xf32>
    %41 = math.exp %40 : vector<8x2xf32>
    %cst_36 = arith.constant dense<0.000000e+00> : vector<8xf32>
    %42 = vector.multi_reduction <add>, %41, %cst_36 [1] : vector<8x2xf32> to vector<8xf32>
    %43 = vector.shape_cast %42 : vector<8xf32> to vector<8x1xf32>
    %44 = math.log %43 : vector<8x1xf32>
    %45 = arith.addf %38, %44 : vector<8x1xf32>
    %46 = vector.broadcast %45 : vector<8x1xf32> to vector<8x2xf32>
    %47 = arith.subf %36, %46 : vector<8x2xf32>
    %48 = math.exp %47 : vector<8x2xf32>
    %c0_37 = arith.constant 0 : index
    %c0_38 = arith.constant 0 : index
    %49 = vector.load %arg12[%c0_37, %c0_38] : memref<8x2xf32, #tpu.memory_space<vmem>>, vector<8x2xf32>
    tpu.vector_store %arg12[%c0_37, %c0_38], %48 {strides = array<i32>} : memref<8x2xf32, #tpu.memory_space<vmem>>, vector<8x2xf32>,
    %c0_39 = arith.constant 0 : index
    %c0_40 = arith.constant 0 : index
    %50 = vector.load %arg3[%c0_39, %c0_40] : memref<8x1xi32, #tpu.memory_space<vmem>>, vector<8x1xi32>
    %51 = tpu.iota {dimensions = array<i32: 1>} : vector<8x2xi32>
    %52 = vector.broadcast %50 : vector<8x1xi32> to vector<8x2xi32>
    %53 = arith.cmpi eq, %51, %52 : vector<8x2xi32>
    %54 = arith.extui %53 : vector<8x2xi1> to vector<8x2xi32>
    %55 = arith.sitofp %54 : vector<8x2xi32> to vector<8x2xf32>
    %56 = arith.mulf %55, %47 : vector<8x2xf32>
    %cst_41 = arith.constant dense<0.000000e+00> : vector<8xf32>
    %57 = vector.multi_reduction <add>, %56, %cst_41 [1] : vector<8x2xf32> to vector<8xf32>
    %58 = vector.shape_cast %57 : vector<8xf32> to vector<8x1xf32>
    %cst_42 = arith.constant 0.000000e+00 : f32
    %59 = vector.broadcast %cst_42 : f32 to vector<8x1xf32>
    %60 = arith.subf %59, %58 : vector<8x1xf32>
    %61 = arith.mulf %28, %29 : vector<8x64xf32>
    %cst_43 = arith.constant dense<0.000000e+00> : vector<8xf32>
    %62 = vector.multi_reduction <add>, %61, %cst_43 [1] : vector<8x64xf32> to vector<8xf32>
    %63 = vector.shape_cast %62 : vector<8xf32> to vector<8x1xf32>
    %64 = arith.mulf %28, %30 : vector<8x64xf32>
    %cst_44 = arith.constant dense<0.000000e+00> : vector<8xf32>
    %65 = vector.multi_reduction <add>, %64, %cst_44 [1] : vector<8x64xf32> to vector<8xf32>
    %66 = vector.shape_cast %65 : vector<8xf32> to vector<8x1xf32>
    %67 = arith.mulf %28, %28 : vector<8x64xf32>
    %cst_45 = arith.constant dense<0.000000e+00> : vector<8xf32>
    %68 = vector.multi_reduction <add>, %67, %cst_45 [1] : vector<8x64xf32> to vector<8xf32>
    %69 = vector.shape_cast %68 : vector<8xf32> to vector<8x1xf32>
    %70 = arith.mulf %29, %29 : vector<8x64xf32>
    %cst_46 = arith.constant dense<0.000000e+00> : vector<8xf32>
    %71 = vector.multi_reduction <add>, %70, %cst_46 [1] : vector<8x64xf32> to vector<8xf32>
    %72 = vector.shape_cast %71 : vector<8xf32> to vector<8x1xf32>
    %73 = arith.mulf %30, %30 : vector<8x64xf32>
    %cst_47 = arith.constant dense<0.000000e+00> : vector<8xf32>
    %74 = vector.multi_reduction <add>, %73, %cst_47 [1] : vector<8x64xf32> to vector<8xf32>
    %75 = vector.shape_cast %74 : vector<8xf32> to vector<8x1xf32>
    %76 = arith.mulf %69, %72 : vector<8x1xf32>
    %77 = math.rsqrt %76 : vector<8x1xf32>
    %78 = arith.mulf %63, %77 : vector<8x1xf32>
    %cst_48 = arith.constant 1.000000e+00 : f32
    %79 = vector.broadcast %cst_48 : f32 to vector<8x1xf32>
    %80 = arith.subf %79, %78 : vector<8x1xf32>
    %81 = arith.mulf %69, %75 : vector<8x1xf32>
    %82 = math.rsqrt %81 : vector<8x1xf32>
    %83 = arith.mulf %66, %82 : vector<8x1xf32>
    %cst_49 = arith.constant 1.000000e+00 : f32
    %84 = vector.broadcast %cst_49 : f32 to vector<8x1xf32>
    %85 = arith.subf %84, %83 : vector<8x1xf32>
    %86 = arith.subf %80, %85 : vector<8x1xf32>
    %cst_50 = arith.constant 5.000000e-01 : f32
    %87 = vector.broadcast %cst_50 : f32 to vector<8x1xf32>
    %88 = arith.addf %86, %87 : vector<8x1xf32>
    %89 = math.absf %88 : vector<8x1xf32>
    %cst_51 = arith.constant 5.000000e-01 : f32
    %90 = vector.broadcast %cst_51 : f32 to vector<8x1xf32>
    %91 = arith.mulf %90, %89 : vector<8x1xf32>
    %92 = math.sqrt %69 : vector<8x1xf32>
    %93 = math.sqrt %72 : vector<8x1xf32>
    %94 = arith.addf %92, %93 : vector<8x1xf32>
    %95 = math.sqrt %75 : vector<8x1xf32>
    %96 = arith.addf %94, %95 : vector<8x1xf32>
    %cst_52 = arith.constant 1.000000e-03 : f32
    %97 = vector.broadcast %cst_52 : f32 to vector<8x1xf32>
    %98 = arith.mulf %97, %96 : vector<8x1xf32>
    %99 = arith.addf %60, %91 : vector<8x1xf32>
    %100 = arith.addf %99, %98 : vector<8x1xf32>
    %101 = vector.shape_cast %100 : vector<8x1xf32> to vector<1x8x1xf32>
    %cst_53 = arith.constant dense<0.000000e+00> : vector<1xf32>
    %102 = vector.multi_reduction <add>, %101, %cst_53 [1, 2] : vector<1x8x1xf32> to vector<1xf32>
    %103 = vector.shape_cast %102 : vector<1xf32> to vector<1x1x1xf32>
    %104 = vector.extract %103[0, 0, 0] : f32 from vector<1x1x1xf32>
    %c0_54 = arith.constant 0 : index
    %c0_55 = arith.constant 0 : index
    %105 = memref.load %arg14[%c0_54, %c0_55] : memref<1x1xf32, #tpu.memory_space<smem>>
    memref.store %104, %arg14[%c0_54, %c0_55] : memref<1x1xf32, #tpu.memory_space<smem>>
    return
  }
}

</mosaic_0001>

<bundles_post_ra>
// kernel: tpu_custom_call.1
= control target key start
LH: loop header
LB: loop body
LE: loop exit
PB: predicated region body
PF: predicated region fallthrough
CT: control target
= control target key end

     0   :  { %20 = vsyncpa [#allocation4], 0  ;;  %v817_v3 = vmov 0.0|0.0   ;;  %vm818_vm0 = vmmov 0   ;;  %v819_v6 = vmov 0.0   ;;  %vm47_vm1 = vcmask 261120   ;;  %s1077_s0 = inlined_call_operand.vmem [shape: f32[8,32], index: 0, kind: input, shape index: {}]   ;;  %s1078_s1 = inlined_call_operand.vmem [shape: f32[8,32], index: 1, kind: input, shape index: {}]   ;;  %s1079_s2 = inlined_call_operand.vmem [shape: f32[8,32], index: 2, kind: input, shape index: {}]   ;;  %s1080_s3 = inlined_call_operand.vmem [shape: s32[8,1], index: 3, kind: input, shape index: {}]   ;;  %s1081_s4 = inlined_call_operand.vmem [shape: f32[32,64], index: 4, kind: input, shape index: {}]   ;;  %s1082_s5 = inlined_call_operand.vmem [shape: f32[1,64], index: 5, kind: input, shape index: {}]   ;;  %s1083_s6 = inlined_call_operand.vmem [shape: f32[64,32], index: 6, kind: input, shape index: {}]   ;;  %s1084_s7 = inlined_call_operand.vmem [shape: f32[1,32], index: 7, kind: input, shape index: {}]   ;;  %s1085_s8 = inlined_call_operand.vmem [shape: f32[32,64], index: 8, kind: input, shape index: {}]   ;;  %s1086_s9 = inlined_call_operand.vmem [shape: f32[1,64], index: 9, kind: input, shape index: {}]   ;;  %s1087_s10 = inlined_call_operand.vmem [shape: f32[64,2], index: 10, kind: input, shape index: {}]   ;;  %s1088_s11 = inlined_call_operand.vmem [shape: f32[1,2], index: 11, kind: input, shape index: {}]   ;;  %s1089_s12 = inlined_call_operand.vmem [shape: f32[8,2], index: 12, kind: output, shape index: {0}]   ;;  %s1090_s13 = inlined_call_operand.hbm [shape: f32[8,64], index: 13, kind: output, shape index: {1}]   ;;  %s1091_s14 = inlined_call_operand.hbm [shape: f32[1,1], index: 14, kind: output, shape index: {2}]  }
   0x1   :  { %v56_v0 = vld [vmem:[%s1081_s4] sm:$0xff]  ;;  %v57_v1 = vld [vmem:[%s1081_s4 + $0x8] sm:$0xff]  ;;  %v58_v2 = vld [vmem:[%s1081_s4 + $0x10] sm:$0xff]  ;;  %719 = vmatprep.subr.bf16.mxu0 %v817_v3  ;;  %649 = vmatprep.mubr.msk.f32.mxu0 %vm818_vm0, %v819_v6 }
   0x2   :  { %v720_v4 = vpack.c.bf16 %v57_v1, %v56_v0  ;;  %v59_v5 = vld [vmem:[%s1081_s4 + $0x18] sm:$0xff]  ;;  %v46_v7 = vld [vmem:[%s1077_s0] sm:$0xff]  ;;  %725 = vmatprep.subr.bf16.mxu1 %v817_v3  ;;  %v62_v11 = vld [vmem:[%s1083_s6 + $0x8] sm:$0xff]  ;;  %674 = vmatprep.mubr.msk.f32.mxu1 %vm818_vm0, %v819_v6 }
   0x3   :  { %v49_v8 = vld [vmem:[%s1078_s1] sm:$0xff]  ;;  %48 = vst.msk [vmem:[#allocation2] sm:$0xff] %vm47_vm1, %v46_v7  ;;  %v723_v12 = vpack.c.bf16 %v59_v5, %v58_v2  ;;  %v63_v14 = vld [vmem:[%s1083_s6 + $0x10] sm:$0xff]  ;;  %v64_v15 = vld [vmem:[%s1083_s6 + $0x18] sm:$0xff] }
   0x4   :  { %50 = vst.msk [vmem:[#allocation2 + $0x8] sm:$0xff] %vm47_vm1, %v49_v8  ;;  %v51_v9 = vld [vmem:[%s1079_s2] sm:$0xff]  ;;  %721 = vmatpush3.bf16.msra.mxu0 %v720_v4 }
   0x5   :  { %v61_v10 = vld [vmem:[%s1083_s6] sm:$0xff]  ;;  %52 = vst.msk [vmem:[#allocation2 + $0x10] sm:$0xff] %vm47_vm1, %v51_v9  ;;  %722 = vmatprep.subr.bf16.mxu0 %v817_v3 }
   0x6   :  { %v726_v13 = vpack.c.bf16 %v62_v11, %v61_v10 }
   0x7   :  { %21 = vsyncpa [#allocation5], 0  ;;  %v729_v16 = vpack.c.bf16 %v64_v15, %v63_v14  ;;  %v65_v17 = vld [vmem:[%s1083_s6 + $0x20] sm:$0xff]  ;;  %v66_v18 = vld [vmem:[%s1083_s6 + $0x28] sm:$0xff]  ;;  %vm179_vm2 = vcmask 523264   ;;  %v820_v48 = vmov 0  }
   0x8   :  { %727 = vmatpush3.bf16.msra.mxu1 %v726_v13  ;;  %724 = vmatpush3.bf16.msra.mxu0 %v723_v12  ;;  %v732_v20 = vpack.c.bf16 %v66_v18, %v65_v17  ;;  %v67_v23 = vld [vmem:[%s1083_s6 + $0x30] sm:$0xff]  ;;  %v68_v24 = vld [vmem:[%s1083_s6 + $0x38] sm:$0xff]  ;;  %v70_v26 = vld [vmem:[%s1085_s8] sm:$0xff]  ;;  %vm459_vm3 = vcmask 15360   ;;  %vm548_vm11 = vcmask 7168  }
   0x9   :  { %728 = vmatprep.subr.bf16.mxu1 %v817_v3  ;;  %737 = vmatprep.subr.bf16.mxu0 %v817_v3  ;;  %v735_v25 = vpack.c.bf16 %v68_v24, %v67_v23  ;;  %v71_v27 = vld [vmem:[%s1085_s8 + $0x8] sm:$0xff]  ;;  %v72_v28 = vld [vmem:[%s1085_s8 + $0x10] sm:$0xff]  ;;  %v73_v30 = vld [vmem:[%s1085_s8 + $0x18] sm:$0xff] }
   0xa   :  { %v53_v19 = vld [vmem:[#allocation2] sm:$0xff]  ;;  %v738_v29 = vpack.c.bf16 %v71_v27, %v70_v26  ;;  %v741_v31 = vpack.c.bf16 %v73_v30, %v72_v28  ;;  %v372_v47 = vld [vmem:[%s1087_s10 + $0x8] sm:$0xff]  ;;  %763 = vset.pattern.permute.xlu1 %v820_v48  ;;  %v373_v50 = vld [vmem:[%s1087_s10 + $0x10] sm:$0xff]  ;;  %764 = vset.pattern.permute.xlu0 %v820_v48 }
   0xb   :  { %650 = vmatmul.mubr.msk.f32.vlgmr.msra.gmra.mrb[0].mxu0 %vm47_vm1, %v53_v19  ;;  %v54_v21 = vld [vmem:[#allocation2 + $0x8] sm:$0xff]  ;;  %v592_v32 = vld [vmem:[%s1082_s5] ss:$0 sm:$0xff]  ;;  %v374_v51 = vld [vmem:[%s1087_s10 + $0x18] sm:$0xff] }
   0xc   :  { %730 = vmatpush3.bf16.msra.mxu1 %v729_v16  ;;  %652 = vmatprep.mubr.msk.f32.mxu0 %vm818_vm0, %v819_v6  ;;  %v55_v22 = vld [vmem:[#allocation2 + $0x10] sm:$0xff]  ;;  %v476_v45 = vld [vmem:[%s1080_s3] sm:$0xff]  ;;  %v747_v52 = vpack.c.bf16 %v374_v51, %v373_v50  ;;  %v376_v54 = vld [vmem:[%s1087_s10 + $0x28] sm:$0xff] }
   0xd   :  { %731 = vmatprep.subr.bf16.mxu1 %v817_v3  ;;  %739 = vmatpush3.bf16.msra.mxu0 %v738_v29  ;;  %v371_v46 = vld [vmem:[%s1087_s10] sm:$0xff]  ;;  %v377_v5 = vld [vmem:[%s1087_s10 + $0x30] sm:$0xff]  ;;  %v378_v7 = vld [vmem:[%s1087_s10 + $0x38] sm:$0xff] }
   0xe   :  { %740 = vmatprep.subr.bf16.mxu0 %v817_v3  ;;  %v744_v49 = vpack.c.bf16 %v372_v47, %v371_v46  ;;  %480 = vperm.xlu1 %763, %v476_v45   ;;  %v375_v53 = vld [vmem:[%s1087_s10 + $0x20] sm:$0xff]  ;;  %v753_v8 = vpack.c.bf16 %v378_v7, %v377_v5 }
   0xf   :  { %653 = vmatmul.mubr.msk.f32.gmra.mrb[2].mxu0 %vm47_vm1, %v54_v21  ;;  %v750_v55 = vpack.c.bf16 %v376_v54, %v375_v53  ;;  %v596_v56 = vld [vmem:[%s1084_s7] ss:$0 sm:$0xff] }
  0x10   :  { %733 = vmatpush3.bf16.msra.mxu1 %v732_v20  ;;  %655 = vmatprep.mubr.msk.f32.mxu0 %vm818_vm0, %v819_v6  ;;  %v600_v9 = vld [vmem:[%s1086_s9] ss:$0 sm:$0xff] }
  0x11   :  { %734 = vmatprep.subr.bf16.mxu1 %v817_v3  ;;  %742 = vmatpush3.bf16.msra.mxu0 %v741_v31  ;;  %v604_v26 = vld [vmem:[%s1088_s11] ss:$0 sm:$0xff] }
  0x13   :  { %656 = vmatmul.mubr.msk.f32.gmra.mrb[4].mxu0 %vm47_vm1, %v55_v22 }
  0x14   :  { %691 = vmatprep.mubr.msk.f32.mxu0 %vm818_vm0, %v819_v6  ;;  %736 = vmatpush3.bf16.msra.mxu1 %v735_v25 }
  0x15   :  { %743 = vmatprep.subr.bf16.mxu1 %v817_v3 }
  0x8d   :  { %v481_v46 = vpop.permute.xlu1 %480 }
  0xde   :  { %v156_v33 = vpop.f32.mrb[0].mxu0 }
  0xdf   :  { %v157_v34 = vadd.f32 %v592_v32, %v156_v33  ;;  %v651_v35 = vpop.f32.mrb[1].mxu0 }
  0xe1   :  { %v170_v36 = vmax.f32 %v157_v34, 0.0 }
  0xe2   :  { %v161_v37 = vpop.f32.mrb[2].mxu0 }
  0xe3   :  { %v162_v38 = vadd.f32 %v592_v32, %v161_v37  ;;  %675 = vmatmul.mubr.msk.f32.vlgmr.msra.gmra.mrb[0].mxu1 %vm179_vm2, %v170_v36  ;;  %v654_v39 = vpop.f32.mrb[3].mxu0 }
  0xe4   :  { %677 = vmatprep.mubr.msk.f32.mxu1 %vm818_vm0, %v819_v6  ;;  %745 = vmatpush3.bf16.msra.mxu1 %v744_v49 }
  0xe5   :  { %v171_v40 = vmax.f32 %v162_v38, 0.0  ;;  %746 = vmatprep.subr.bf16.mxu1 %v817_v3 }
  0xe6   :  { %v166_v41 = vpop.f32.mrb[4].mxu0 }
  0xe7   :  { %v167_v42 = vadd.f32 %v592_v32, %v166_v41  ;;  %678 = vmatmul.mubr.msk.f32.gmra.mrb[2].mxu1 %vm179_vm2, %v171_v40  ;;  %v657_v43 = vpop.f32.mrb[5].mxu0 }
  0xe8   :  { %680 = vmatprep.mubr.msk.f32.mxu1 %vm818_vm0, %v819_v6  ;;  %748 = vmatpush3.bf16.msra.mxu1 %v747_v52  ;;  %v477_v43 = vlaneseq }
  0xe9   :  { %v172_v44 = vmax.f32 %v167_v42, 0.0  ;;  %749 = vmatprep.subr.bf16.mxu1 %v817_v3 }
  0xeb   :  { %681 = vmatmul.mubr.msk.f32.gmra.mrb[4].mxu1 %vm179_vm2, %v172_v44  ;;  %v478_v44 = vand.u32 127, %v477_v43 }
  0xec   :  { %716 = vmatprep.mubr.msk.f32.mxu1 %vm818_vm0, %v819_v6  ;;  %751 = vmatpush3.bf16.msra.mxu1 %v750_v55 }
  0xed   :  { %752 = vmatprep.subr.bf16.mxu1 %v817_v3  ;;  %vm482_vm4 = vcmp.eq.s32.totalorder %v478_v44, %v481_v46 }
  0xee   :  { %v606_v49 = vsel %vm482_vm4, 1.0, %v819_v6 }
  0xf0   :  { %754 = vmatpush3.bf16.msra.mxu1 %v753_v8 }
 0x1b6   :  { %v255_v57 = vpop.f32.mrb[0].mxu1 }
 0x1b7   :  { %v256_v58 = vadd.f32 %v596_v56, %v255_v57  ;;  %v676_v59 = vpop.f32.mrb[1].mxu1 }
 0x1b9   :  { %v269_v60 = vmax.f32 %v256_v58, 0.0 }
 0x1ba   :  { %v260_v61 = vpop.f32.mrb[2].mxu1 }
 0x1bb   :  { %v261_v62 = vadd.f32 %v596_v56, %v260_v61  ;;  %692 = vmatmul.mubr.msk.f32.vlgmr.msra.gmra.mrb[6].mxu0 %vm47_vm1, %v269_v60  ;;  %v679_v63 = vpop.f32.mrb[3].mxu1 }
 0x1bc   :  { %694 = vmatprep.mubr.msk.f32.mxu0 %vm818_vm0, %v819_v6 }
 0x1bd   :  { %v270_v0 = vmax.f32 %v261_v62, 0.0 }
 0x1be   :  { %v265_v1 = vpop.f32.mrb[4].mxu1 }
 0x1bf   :  { %v266_v2 = vadd.f32 %v596_v56, %v265_v1  ;;  %695 = vmatmul.mubr.msk.f32.gmra.mrb[8].mxu0 %vm47_vm1, %v270_v0  ;;  %v682_v3 = vpop.f32.mrb[5].mxu1 }
 0x1c0   :  { %697 = vmatprep.mubr.msk.f32.mxu0 %vm818_vm0, %v819_v6 }
 0x1c1   :  { %v271_v4 = vmax.f32 %v266_v2, 0.0 }
 0x1c3   :  { %698 = vmatmul.mubr.msk.f32.gmra.mrb[10].mxu0 %vm47_vm1, %v271_v4 }
 0x28e   :  { %v353_v10 = vpop.f32.mrb[6].mxu0 }
 0x28f   :  { %v354_v11 = vadd.f32 %v600_v9, %v353_v10  ;;  %v693_v12 = vpop.f32.mrb[7].mxu0 }
 0x291   :  { %v367_v13 = vmax.f32 %v354_v11, 0.0 }
 0x292   :  { %v358_v14 = vpop.f32.mrb[8].mxu0 }
 0x293   :  { %370 = vst.msk [vmem:[#allocation3] sm:$0xff] %vm179_vm2, %v367_v13  ;;  %v359_v15 = vadd.f32 %v600_v9, %v358_v14  ;;  %717 = vmatmul.mubr.msk.f32.vlgmr.msra.gmra.mrb[6].mxu1 %vm179_vm2, %v367_v13  ;;  %v696_v16 = vpop.f32.mrb[9].mxu0  ;;  %v498_v17 = vmul.f32 %v367_v13, %v367_v13 }
 0x295   :  { %v368_v18 = vmax.f32 %v359_v15, 0.0  ;;  %v499_v19 = vsel %vm179_vm2, %v498_v17, 0.0 }
 0x296   :  { %500 = vadd.xlane.f32.xlu1 %v499_v19  ;;  %v363_v20 = vpop.f32.mrb[10].mxu0 }
 0x297   :  { %v364_v21 = vadd.f32 %v600_v9, %v363_v20  ;;  %v490_v22 = vmul.f32 %v368_v18, %v367_v13  ;;  %v699_v23 = vpop.f32.mrb[11].mxu0  ;;  %v502_v34 = vmul.f32 %v368_v18, %v368_v18 }
 0x299   :  { %v369_v24 = vmax.f32 %v364_v21, 0.0  ;;  %v503_v37 = vsel %vm179_vm2, %v502_v34, 0.0  ;;  %v491_v40 = vsel %vm179_vm2, %v490_v22, 0.0 }
 0x29b   :  { %v494_v25 = vmul.f32 %v369_v24, %v367_v13  ;;  %v506_v38 = vmul.f32 %v369_v24, %v369_v24 }
 0x29d   :  { %v507_v39 = vsel %vm179_vm2, %v506_v38, 0.0  ;;  %v495_v41 = vsel %vm179_vm2, %v494_v25, 0.0 }
 0x323   :  { %v501_v57 = vpop.xlane.xlu1 %500 }
 0x324   :  { %vm524_vm8 = vcmp.eq.f32.partialorder %v501_v57, inf  ;;  %v527_v17 = vand.u32 2147483648, %v501_v57  ;;  %vm526_vm10 = vcmp.eq.f32.partialorder %v501_v57, 0.0 }
 0x366   :  { %v455_v27 = vpop.f32.mrb[6].mxu1 }
 0x367   :  { %v456_v28 = vadd.f32 %v604_v26, %v455_v27  ;;  %v718_v29 = vpop.f32.mrb[7].mxu1 }
 0x369   :  { %v460_v30 = vsel %vm459_vm3, %v456_v28, -inf }
 0x36a   :  { %461 = vmax.xlane.f32.xlu0 %v460_v30 }
 0x3f7   :  { %v462_v31 = vpop.xlane.xlu0 %461 }
 0x3f8   :  { %v463_v32 = vsub.f32 %v456_v28, %v462_v31 }
 0x3fa   :  { %v464_v33 = vmul.f32 1.442695, %v463_v32 }
 0x3fc   :  { %765 = vpow2.f32 %v464_v33 }
 0x406   :  { %v766_v35 = vpop.eup %765 }
 0x407   :  { %v466_v36 = vsel %vm459_vm3, %v766_v35, 0.0 }
 0x408   :  { %467 = vadd.xlane.f32.xlu0 %v466_v36 }
 0x40c   :  { %504 = vadd.xlane.f32.xlu0 %v503_v37 }
 0x410   :  { %508 = vadd.xlane.f32.xlu0 %v507_v39 }
 0x414   :  { %492 = vadd.xlane.f32.xlu0 %v491_v40 }
 0x418   :  { %496 = vadd.xlane.f32.xlu0 %v495_v41 }
 0x495   :  { %v468_v42 = vpop.xlane.xlu0 %467 }
 0x496   :  { %767 = vlog2.f32 %v468_v42 }
 0x499   :  { %v505_v55 = vpop.xlane.xlu0 %504 }
 0x49a   :  { %v510_v59 = vmul.f32 %v505_v55, %v501_v57  ;;  %vm531_vm5 = vcmp.eq.f32.partialorder %v505_v55, inf  ;;  %v534_v11 = vand.u32 2147483648, %v505_v55  ;;  %vm533_vm7 = vcmp.eq.f32.partialorder %v505_v55, 0.0 }
 0x49d   :  { %v509_v56 = vpop.xlane.xlu0 %508 }
 0x49e   :  { %v514_v58 = vmul.f32 %v509_v56, %v501_v57  ;;  %vm539_vm6 = vcmp.eq.f32.partialorder %v509_v56, inf  ;;  %v542_v13 = vand.u32 2147483648, %v509_v56  ;;  %vm541_vm9 = vcmp.eq.f32.partialorder %v509_v56, 0.0 }
 0x4a0   :  { %v768_v45 = vpop.eup %767 }
 0x4a1   :  { %v470_v47 = vmul.f32 0.6931472, %v768_v45  ;;  %v493_v6 = vpop.xlane.xlu0 %492 }
 0x4a3   :  { %v471_v48 = vadd.f32 %v470_v47, %v462_v31 }
 0x4a5   :  { %v472_v50 = vsub.f32 %v456_v28, %v471_v48  ;;  %v497_v62 = vpop.xlane.xlu0 %496 }
 0x4a7   :  { %v473_v51 = vmul.f32 1.442695, %v472_v50  ;;  %v485_v52 = vmul.f32 %v606_v49, %v472_v50 }
 0x4a9   :  { %769 = vpow2.f32 %v473_v51  ;;  %v486_v53 = vsel %vm459_vm3, %v485_v52, 0.0 }
 0x4aa   :  { %487 = vadd.xlane.f32.xlu0 %v486_v53  ;;  %771 = vrsqrt.f32 %v514_v58 }
 0x4ab   :  { %773 = vrsqrt.f32 %v510_v59 }
 0x4ac   :  { %775 = vrsqrt.f32 %v505_v55 }
 0x4ad   :  { %777 = vrsqrt.f32 %v501_v57 }
 0x4ae   :  { %779 = vrsqrt.f32 %v509_v56 }
 0x4b3   :  { %v770_v54 = vpop.eup %769 }
 0x4b4   :  { %475 = vst.msk [vmem:[%s1089_s12] sm:$0xff] %vm459_vm3, %v770_v54  ;;  %v772_v60 = vpop.eup %771  ;;  %s821_s12 = smov [#allocation3]  }
 0x4b5   :  { %v774_v61 = vpop.eup %773  ;;  %v516_v63 = vmul.f32 %v772_v60, %v497_v62  ;;  %s569_s6 = sshll.u32 %s821_s12, 4  ;;  %s570_s6 = int_to_ptr.vmem [resolvable:$true] %s569_s6 }
 0x4b6   :  { %v512_v0 = vmul.f32 %v774_v61, %v493_v6  ;;  %v776_v1 = vpop.eup %775  ;;  %s781_s1 = scalar_lea.vmem %s570_s6, 128  ;;  %p786_p1 = scmp.lt.s32.totalorder %s570_s6, %s570_s6 }
 0x4b7   :  { %v778_v2 = vpop.eup %777  ;;  %v517_v3 = vsub.f32 1.0, %v516_v63  ;;  %v530_v7 = vmul.f32 %v776_v1, %v505_v55  ;;  %p782_p0 = scmp.ne.s32.totalorder %s570_s6, %s781_s1  ;;  %p787_p2 = scmp.lt.s32.totalorder %s781_s1, %s781_s1 }
 0x4b8   :  { %v780_v4 = vpop.eup %779  ;;  %v513_v5 = vsub.f32 1.0, %v512_v0  ;;  %v523_v9 = vmul.f32 %v778_v2, %v501_v57 }
 0x4b9   :  { %v538_v10 = vmul.f32 %v780_v4, %v509_v56  ;;  %v532_v12 = vsel %vm531_vm5, %v505_v55, %v530_v7  ;;  %p788_p3 = por %p787_p2, %p786_p1 }
 0x4ba   :  { %v518_v8 = vsub.f32 %v513_v5, %v517_v3  ;;  %v525_v15 = vsel %vm524_vm8, %v501_v57, %v523_v9  ;;  %v535_v18 = vsel %vm533_vm7, %v534_v11, %v532_v12 }
 0x4bb   :  { %v540_v16 = vsel %vm539_vm6, %v509_v56, %v538_v10  ;;  %v528_v19 = vsel %vm526_vm10, %v527_v17, %v525_v15  ;;  %p789_p4 = pnand %p788_p3, %p782_p0 }
 0x4bc   :  { %v519_v14 = vadd.f32 0.5, %v518_v8  ;;  %v543_v20 = vsel %vm541_vm9, %v542_v13, %v540_v16  ;;  %v536_v22 = vadd.f32 %v535_v18, %v528_v19 }
 0x4be   :  { %v520_v21 = vand.u32 2147483647, %v519_v14  ;;  %v544_v23 = vadd.f32 %v543_v20, %v536_v22 }
 0x4c0   :  { %v521_v25 = vmul.f32 0.5, %v520_v21  ;;  %v545_v28 = vmul.f32 0.001, %v544_v23 }
 0x537   :  { %v488_v24 = vpop.xlane.xlu0 %487 }
 0x538   :  { %v489_v26 = vsub.f32 0.0, %v488_v24 }
 0x53a   :  { %v546_v27 = vadd.f32 %v521_v25, %v489_v26 }
 0x53c   :  { %v547_v29 = vadd.f32 %v546_v27, %v545_v28 }
 0x53e   :  { %v549_v30 = vsel %vm548_vm11, %v547_v29, 0.0 }
 0x53f   :  { %550 = vadd.xlane.f32.xlu0 %v549_v30 }
 0x540   :  { %792 = shalt.err (!%p789_p4)
}
 0x541   :  { %s793_s2 = scalar_lea.hbm %s1090_s13, 128 }
 0x542   :  { %p794_p5 = scmp.ne.s32.totalorder %s1090_s13, %s793_s2  ;;  %p797_p6 = scmp.lt.u32.totalorder %s793_s2, %s1090_s13 }
 0x544   :  { %p799_p7 = pnand %p797_p6, %p794_p5 }
 0x546   :  { %802 = shalt.err (!%p799_p7)
}
 0x547   :  { %572 = dma.vmem_to_hbm [thread:$0]  %s570_s6, 128, %s1090_s13, [#allocation4]  }
 0x548   :  { %s803_s21 = scalar_lea.hbm %s1091_s14, 16 }
 0x549   :  { %p804_p8 = scmp.ne.s32.totalorder %s1091_s14, %s803_s21  ;;  %p807_p9 = scmp.lt.u32.totalorder %s803_s21, %s1091_s14 }
 0x54b   :  { %p809_p10 = pnand %p807_p9, %p804_p8 }
 0x5cc   :  { %v551_v31 = vpop.xlane.xlu0 %550 }
 0x5cd   :  { %v552_v32 = vrot.slane %v551_v31, 4 }
 0x5cf   :  { %v553_v33 = vadd.f32 %v552_v32, %v551_v31 }
 0x5d1   :  { %v554_v34 = vrot.slane %v553_v33, 2 }
 0x5d3   :  { %v555_v35 = vadd.f32 %v554_v34, %v553_v33 }
 0x5d5   :  { %v556_v36 = vrot.slane %v555_v35, 1 }
 0x5d7   :  { %v557_v37 = vadd.f32 %v556_v36, %v555_v35 }
 0x5d9   :  { %755 = vpush %v557_v37 }
 0x60a   :  { %s756_s19 = spop %755 }
 0x60b   :  { %560 = sst [smem:[#allocation6]] %s756_s19 }
 0x60c   :  { %812 = shalt.err (!%p809_p10)
}
 0x60d   :  { %s822_s7 = smov [#allocation6]  }
 0x60e   :  { %580 = dma.smem_to_hbm %s822_s7, 16, %s1091_s14, [#allocation5]  }
 0x60f   :  { %813 = dma.done.wait [#allocation4], 128  }
 0x610   :  { %814 = vsyncadd [#allocation4], 4294967168 }
 0x611   :  { %815 = dma.done.wait [#allocation5], 16  }
 0x612   :  { %816 = vsyncadd [#allocation5], 4294967280 }
 0x613   :  { %589 = sfence }
 0x614   :  { %590 = vsyncpa [#allocation4], 1 }
 0x615   :  { %591 = vsyncpa [#allocation5], 1 }

</bundles_post_ra>
